<compile_context>
chip_gen: v6e
topology: v6e:2x2x1
jax: 0.10.0
libtpu: 0.0.40
codegen_flags: <defaults>
</compile_context>

<pallas_src>
import functools

import jax
import jax.numpy as jnp
from jax import lax
from jax.experimental import pallas as pl
from jax.experimental.pallas import tpu as pltpu


def _lstm_lm_kernel(x_ref, wih_ref, whh_ref, b_ref, wout_ref, bout_ref,
                    out_ref, *, seq_len, batch, hidden_dim):
    """Single-layer LSTM + output projection, whole problem in VMEM.

    x_ref    : (T*B, A)   time-major inputs, batch padded to sublane tile
    wih_ref  : (A, 4H)    input->gates weights (transposed, gate order i,f,g,o)
    whh_ref  : (H, 4H)    hidden->gates weights (transposed)
    b_ref    : (1, 4H)    bias_ih + bias_hh
    wout_ref : (H, Ap)    hidden2out weight (transposed, lane-padded to 128)
    bout_ref : (1, Ap)    hidden2out bias (lane-padded to 128)
    out_ref  : (T*B, Ap)  logits, time-major, lane-dense
    """
    T, B, H = seq_len, batch, hidden_dim

    wih = wih_ref[...]
    whh = whh_ref[...]

    # ---- Hoisted input projection: ONE batched MXU matmul for all timesteps,
    #      bias broadcast once (not re-materialized per step).
    pre = jnp.dot(x_ref[...], wih,
                  preferred_element_type=jnp.float32) + b_ref[...]   # (T*B, 4H)

    # Lane mask selecting the tanh-activated g gate (columns [2H, 3H));
    # hoisted so the broadcasted_iota is built once, not per step.
    lane = lax.broadcasted_iota(jnp.int32, (B, 4 * H), 1)
    g_mask = (lane >= 2 * H) & (lane < 3 * H)

    # h0 = c0 = 0 (module's init_hidden with zeros).
    h = jnp.zeros((B, H), jnp.float32)
    c = jnp.zeros((B, H), jnp.float32)
    hs = []

    # ---- Fully unrolled recurrence: only h @ W_hh touches the MXU per step;
    #      a single full-vreg tanh per step handles all four gates
    #      (sigmoid(x) = 0.5 * (1 + tanh(x/2))).
    for t in range(T):
        gates = pre[t * B:(t + 1) * B, :] + jnp.dot(
            h, whh, preferred_element_type=jnp.float32)              # (B, 4H)
        th = jnp.tanh(jnp.where(g_mask, gates, 0.5 * gates))
        act = jnp.where(g_mask, th, 0.5 + 0.5 * th)
        # PyTorch LSTM gate ordering: [input, forget, cell(g), output]
        i_g = act[:, 0 * H:1 * H]
        f_g = act[:, 1 * H:2 * H]
        g_g = act[:, 2 * H:3 * H]
        o_g = act[:, 3 * H:4 * H]
        c = f_g * c + i_g * g_g
        h = o_g * jnp.tanh(c)
        hs.append(h)                 # register-resident; no VMEM round-trip

    # ---- Register-resident hidden slab -> ONE output matmul and ONE
    #      lane-dense (128-wide) unmasked store.
    h_all = jnp.concatenate(hs, axis=0)                              # (T*B, H)
    out_ref[...] = (jnp.dot(h_all, wout_ref[...],
                            preferred_element_type=jnp.float32)
                    + bout_ref[...]).astype(out_ref.dtype)


def rnn_lm_forward(x_btA, wih, whh, b_ih, b_hh, w_out, b_out):
    """x_btA: (B, T, A) float32 -> logits (B, T, A) float32."""
    B, T, A = x_btA.shape
    H = whh.shape[1]
    Bp = max(8, ((B + 7) // 8) * 8)            # pad batch to the 8-sublane tile
    Ap = max(128, ((A + 127) // 128) * 128)    # lane-dense output width

    # Time-major, batch padded, flattened to (T*Bp, A); padded rows are zeros
    # and evolve independently, so they never affect the real batch rows.
    x_tba = jnp.transpose(x_btA, (1, 0, 2))                  # (T, B, A)
    x_tba = jnp.pad(x_tba, ((0, 0), (0, Bp - B), (0, 0)))    # (T, Bp, A)
    x2d = x_tba.reshape(T * Bp, A)                           # (T*Bp, A)

    wih_t = wih.T                                            # (A, 4H)
    whh_t = whh.T                                            # (H, 4H)
    bias = (b_ih + b_hh).reshape(1, 4 * H)                   # (1, 4H)
    # Zero-pad the output projection to a lane-dense (multiple of 128) width
    # so the kernel's final store is unmasked.
    wout_t = jnp.pad(w_out.T, ((0, 0), (0, Ap - A)))         # (H, Ap)
    bout = jnp.pad(b_out, ((0, Ap - A),)).reshape(1, Ap)     # (1, Ap)

    kernel = functools.partial(_lstm_lm_kernel,
                               seq_len=T, batch=Bp, hidden_dim=H)

    full = lambda shape: pl.BlockSpec(shape, lambda i: (0,) * len(shape))

    out2d = pl.pallas_call(
        kernel,
        out_shape=jax.ShapeDtypeStruct((T * Bp, Ap), jnp.float32),
        grid_spec=pltpu.PrefetchScalarGridSpec(
            num_scalar_prefetch=0,
            grid=(1,),
            in_specs=[
                full((T * Bp, A)),
                full((A, 4 * H)),
                full((H, 4 * H)),
                full((1, 4 * H)),
                full((H, Ap)),
                full((1, Ap)),
            ],
            out_specs=full((T * Bp, Ap)),
        ),
        compiler_params=pltpu.CompilerParams(
            dimension_semantics=("arbitrary",)),
    )(x2d, wih_t, whh_t, bias, wout_t, bout)

    out_tba = out2d.reshape(T, Bp, Ap)[:, :B, :A]            # drop batch/lane pad
    return jnp.transpose(out_tba, (1, 0, 2))                 # (B, T, A)


def _reference_forward(x_btA, wih, whh, b_ih, b_hh, w_out, b_out):
    """Pure-JAX reference (PyTorch LSTM semantics) for validation."""
    B, T, A = x_btA.shape
    H = whh.shape[1]
    h = jnp.zeros((B, H), jnp.float32)
    c = jnp.zeros((B, H), jnp.float32)

    def step(carry, x_t):
        h, c = carry
        gates = x_t @ wih.T + b_ih + h @ whh.T + b_hh
        i_g = jax.nn.sigmoid(gates[:, 0 * H:1 * H])
        f_g = jax.nn.sigmoid(gates[:, 1 * H:2 * H])
        g_g = jnp.tanh(gates[:, 2 * H:3 * H])
        o_g = jax.nn.sigmoid(gates[:, 3 * H:4 * H])
        c = f_g * c + i_g * g_g
        h = o_g * jnp.tanh(c)
        return (h, c), h @ w_out.T + b_out

    (_, _), outs = lax.scan(step, (h, c), jnp.transpose(x_btA, (1, 0, 2)))
    return jnp.transpose(outs, (1, 0, 2))


if __name__ == "__main__":
    # Small shapes implied by the module: batch=2, seq=8, hidden_dim=32,
    # alphabet_size=16, num_layers=1, network_type='lstm'.
    B, T, H, A = 2, 8, 32, 16

    key = jax.random.PRNGKey(0)
    ks = jax.random.split(key, 8)
    bound = 1.0 / jnp.sqrt(H)  # PyTorch default uniform init range

    x = jax.random.normal(ks[0], (B, T, A), dtype=jnp.float32)
    wih = jax.random.uniform(ks[1], (4 * H, A), jnp.float32, -bound, bound)
    whh = jax.random.uniform(ks[2], (4 * H, H), jnp.float32, -bound, bound)
    b_ih = jax.random.uniform(ks[3], (4 * H,), jnp.float32, -bound, bound)
    b_hh = jax.random.uniform(ks[4], (4 * H,), jnp.float32, -bound, bound)
    w_out = jax.random.uniform(ks[5], (A, H), jnp.float32, -bound, bound)
    b_out = jax.random.uniform(ks[6], (A,), jnp.float32, -bound, bound)

    logits = rnn_lm_forward(x, wih, whh, b_ih, b_hh, w_out, b_out)
    logits = jax.block_until_ready(logits)

    ref = _reference_forward(x, wih, whh, b_ih, b_hh, w_out, b_out)
    assert logits.shape == (B, T, A)
    assert jnp.allclose(logits, ref, atol=1e-5, rtol=1e-5)

    print("KERNEL_OK")
</pallas_src>

<mosaic_0001>
module attributes {stable_mosaic.version = 11 : i64} {
  func.func @_lstm_lm_kernel(%arg0: i32, %arg1: memref<64x16xf32, #tpu.memory_space<vmem>>, %arg2: memref<16x128xf32, #tpu.memory_space<vmem>>, %arg3: memref<32x128xf32, #tpu.memory_space<vmem>>, %arg4: memref<1x128xf32, #tpu.memory_space<vmem>>, %arg5: memref<32x128xf32, #tpu.memory_space<vmem>>, %arg6: memref<1x128xf32, #tpu.memory_space<vmem>>, %arg7: memref<64x128xf32, #tpu.memory_space<vmem>>) attributes {dimension_semantics = [#tpu.dimension_semantics<arbitrary>], iteration_bounds = array<i64: 1>, scalar_prefetch = 0 : i64, scratch_operands = 0 : i64, tpu.core_type = #tpu.core_type<tc>, window_params = [{pipeline_mode = #tpu.pipeline_mode<synchronous>, transform_indices = @transform_0, window_bounds = array<i64: 64, 16>}, {pipeline_mode = #tpu.pipeline_mode<synchronous>, transform_indices = @transform_1, window_bounds = array<i64: 16, 128>}, {pipeline_mode = #tpu.pipeline_mode<synchronous>, transform_indices = @transform_2, window_bounds = array<i64: 32, 128>}, {pipeline_mode = #tpu.pipeline_mode<synchronous>, transform_indices = @transform_3, window_bounds = array<i64: 1, 128>}, {pipeline_mode = #tpu.pipeline_mode<synchronous>, transform_indices = @transform_4, window_bounds = array<i64: 32, 128>}, {pipeline_mode = #tpu.pipeline_mode<synchronous>, transform_indices = @transform_5, window_bounds = array<i64: 1, 128>}, {pipeline_mode = #tpu.pipeline_mode<synchronous>, transform_indices = @transform_6, window_bounds = array<i64: 64, 128>}]} {
    %c0 = arith.constant 0 : index
    %c0_0 = arith.constant 0 : index
    %0 = vector.load %arg2[%c0, %c0_0] : memref<16x128xf32, #tpu.memory_space<vmem>>, vector<16x128xf32>
    %c0_1 = arith.constant 0 : index
    %c0_2 = arith.constant 0 : index
    %1 = vector.load %arg3[%c0_1, %c0_2] : memref<32x128xf32, #tpu.memory_space<vmem>>, vector<32x128xf32>
    %c0_3 = arith.constant 0 : index
    %c0_4 = arith.constant 0 : index
    %2 = vector.load %arg1[%c0_3, %c0_4] : memref<64x16xf32, #tpu.memory_space<vmem>>, vector<64x16xf32>
    %cst = arith.constant dense<0.000000e+00> : vector<64x128xf32>
    %3 = tpu.matmul %2, %0, %cst {dimension_numbers = #tpu.dot_dimension_numbers<[1], [0], [0], [1], [0, 0, 1, 1], [], []>} : vector<64x16xf32>, vector<16x128xf32>, vector<64x128xf32> -> vector<64x128xf32>
    %c0_5 = arith.constant 0 : index
    %c0_6 = arith.constant 0 : index
    %4 = vector.load %arg4[%c0_5, %c0_6] : memref<1x128xf32, #tpu.memory_space<vmem>>, vector<1x128xf32>
    %5 = vector.broadcast %4 : vector<1x128xf32> to vector<64x128xf32>
    %6 = arith.addf %3, %5 : vector<64x128xf32>
    %7 = tpu.iota {dimensions = array<i32: 1>} : vector<8x128xi32>
    %c64_i32 = arith.constant 64 : i32
    %8 = vector.broadcast %c64_i32 : i32 to vector<8x128xi32>
    %9 = arith.cmpi sge, %7, %8 : vector<8x128xi32>
    %c96_i32 = arith.constant 96 : i32
    %10 = vector.broadcast %c96_i32 : i32 to vector<8x128xi32>
    %11 = arith.cmpi slt, %7, %10 : vector<8x128xi32>
    %12 = arith.andi %9, %11 : vector<8x128xi1>
    %cst_7 = arith.constant 0.000000e+00 : f32
    %13 = vector.broadcast %cst_7 : f32 to vector<8x32xf32>
    %cst_8 = arith.constant 0.000000e+00 : f32
    %14 = vector.broadcast %cst_8 : f32 to vector<8x32xf32>
    %15 = vector.extract_strided_slice %6 {offsets = [0, 0], sizes = [8, 128], strides = [1, 1]} : vector<64x128xf32> to vector<8x128xf32>
    %cst_9 = arith.constant dense<0.000000e+00> : vector<8x128xf32>
    %16 = tpu.matmul %13, %1, %cst_9 {dimension_numbers = #tpu.dot_dimension_numbers<[1], [0], [0], [1], [0, 0, 1, 1], [], []>} : vector<8x32xf32>, vector<32x128xf32>, vector<8x128xf32> -> vector<8x128xf32>
    %17 = arith.addf %15, %16 : vector<8x128xf32>
    %cst_10 = arith.constant 5.000000e-01 : f32
    %18 = vector.broadcast %cst_10 : f32 to vector<8x128xf32>
    %19 = arith.mulf %18, %17 : vector<8x128xf32>
    %20 = arith.select %12, %17, %19 : vector<8x128xi1>, vector<8x128xf32>
    %21 = math.tanh %20 : vector<8x128xf32>
    %cst_11 = arith.constant 5.000000e-01 : f32
    %22 = vector.broadcast %cst_11 : f32 to vector<8x128xf32>
    %23 = arith.mulf %22, %21 : vector<8x128xf32>
    %cst_12 = arith.constant 5.000000e-01 : f32
    %24 = vector.broadcast %cst_12 : f32 to vector<8x128xf32>
    %25 = arith.addf %24, %23 : vector<8x128xf32>
    %26 = arith.select %12, %21, %25 : vector<8x128xi1>, vector<8x128xf32>
    %27 = vector.extract_strided_slice %26 {offsets = [0, 0], sizes = [8, 32], strides = [1, 1]} : vector<8x128xf32> to vector<8x32xf32>
    %28 = vector.extract_strided_slice %26 {offsets = [0, 32], sizes = [8, 32], strides = [1, 1]} : vector<8x128xf32> to vector<8x32xf32>
    %29 = vector.extract_strided_slice %26 {offsets = [0, 64], sizes = [8, 32], strides = [1, 1]} : vector<8x128xf32> to vector<8x32xf32>
    %30 = vector.extract_strided_slice %26 {offsets = [0, 96], sizes = [8, 32], strides = [1, 1]} : vector<8x128xf32> to vector<8x32xf32>
    %31 = arith.mulf %28, %14 : vector<8x32xf32>
    %32 = arith.mulf %27, %29 : vector<8x32xf32>
    %33 = arith.addf %31, %32 : vector<8x32xf32>
    %34 = math.tanh %33 : vector<8x32xf32>
    %35 = arith.mulf %30, %34 : vector<8x32xf32>
    %36 = vector.extract_strided_slice %6 {offsets = [8, 0], sizes = [8, 128], strides = [1, 1]} : vector<64x128xf32> to vector<8x128xf32>
    %cst_13 = arith.constant dense<0.000000e+00> : vector<8x128xf32>
    %37 = tpu.matmul %35, %1, %cst_13 {dimension_numbers = #tpu.dot_dimension_numbers<[1], [0], [0], [1], [0, 0, 1, 1], [], []>} : vector<8x32xf32>, vector<32x128xf32>, vector<8x128xf32> -> vector<8x128xf32>
    %38 = arith.addf %36, %37 : vector<8x128xf32>
    %cst_14 = arith.constant 5.000000e-01 : f32
    %39 = vector.broadcast %cst_14 : f32 to vector<8x128xf32>
    %40 = arith.mulf %39, %38 : vector<8x128xf32>
    %41 = arith.select %12, %38, %40 : vector<8x128xi1>, vector<8x128xf32>
    %42 = math.tanh %41 : vector<8x128xf32>
    %cst_15 = arith.constant 5.000000e-01 : f32
    %43 = vector.broadcast %cst_15 : f32 to vector<8x128xf32>
    %44 = arith.mulf %43, %42 : vector<8x128xf32>
    %cst_16 = arith.constant 5.000000e-01 : f32
    %45 = vector.broadcast %cst_16 : f32 to vector<8x128xf32>
    %46 = arith.addf %45, %44 : vector<8x128xf32>
    %47 = arith.select %12, %42, %46 : vector<8x128xi1>, vector<8x128xf32>
    %48 = vector.extract_strided_slice %47 {offsets = [0, 0], sizes = [8, 32], strides = [1, 1]} : vector<8x128xf32> to vector<8x32xf32>
    %49 = vector.extract_strided_slice %47 {offsets = [0, 32], sizes = [8, 32], strides = [1, 1]} : vector<8x128xf32> to vector<8x32xf32>
    %50 = vector.extract_strided_slice %47 {offsets = [0, 64], sizes = [8, 32], strides = [1, 1]} : vector<8x128xf32> to vector<8x32xf32>
    %51 = vector.extract_strided_slice %47 {offsets = [0, 96], sizes = [8, 32], strides = [1, 1]} : vector<8x128xf32> to vector<8x32xf32>
    %52 = arith.mulf %49, %33 : vector<8x32xf32>
    %53 = arith.mulf %48, %50 : vector<8x32xf32>
    %54 = arith.addf %52, %53 : vector<8x32xf32>
    %55 = math.tanh %54 : vector<8x32xf32>
    %56 = arith.mulf %51, %55 : vector<8x32xf32>
    %57 = vector.extract_strided_slice %6 {offsets = [16, 0], sizes = [8, 128], strides = [1, 1]} : vector<64x128xf32> to vector<8x128xf32>
    %cst_17 = arith.constant dense<0.000000e+00> : vector<8x128xf32>
    %58 = tpu.matmul %56, %1, %cst_17 {dimension_numbers = #tpu.dot_dimension_numbers<[1], [0], [0], [1], [0, 0, 1, 1], [], []>} : vector<8x32xf32>, vector<32x128xf32>, vector<8x128xf32> -> vector<8x128xf32>
    %59 = arith.addf %57, %58 : vector<8x128xf32>
    %cst_18 = arith.constant 5.000000e-01 : f32
    %60 = vector.broadcast %cst_18 : f32 to vector<8x128xf32>
    %61 = arith.mulf %60, %59 : vector<8x128xf32>
    %62 = arith.select %12, %59, %61 : vector<8x128xi1>, vector<8x128xf32>
    %63 = math.tanh %62 : vector<8x128xf32>
    %cst_19 = arith.constant 5.000000e-01 : f32
    %64 = vector.broadcast %cst_19 : f32 to vector<8x128xf32>
    %65 = arith.mulf %64, %63 : vector<8x128xf32>
    %cst_20 = arith.constant 5.000000e-01 : f32
    %66 = vector.broadcast %cst_20 : f32 to vector<8x128xf32>
    %67 = arith.addf %66, %65 : vector<8x128xf32>
    %68 = arith.select %12, %63, %67 : vector<8x128xi1>, vector<8x128xf32>
    %69 = vector.extract_strided_slice %68 {offsets = [0, 0], sizes = [8, 32], strides = [1, 1]} : vector<8x128xf32> to vector<8x32xf32>
    %70 = vector.extract_strided_slice %68 {offsets = [0, 32], sizes = [8, 32], strides = [1, 1]} : vector<8x128xf32> to vector<8x32xf32>
    %71 = vector.extract_strided_slice %68 {offsets = [0, 64], sizes = [8, 32], strides = [1, 1]} : vector<8x128xf32> to vector<8x32xf32>
    %72 = vector.extract_strided_slice %68 {offsets = [0, 96], sizes = [8, 32], strides = [1, 1]} : vector<8x128xf32> to vector<8x32xf32>
    %73 = arith.mulf %70, %54 : vector<8x32xf32>
    %74 = arith.mulf %69, %71 : vector<8x32xf32>
    %75 = arith.addf %73, %74 : vector<8x32xf32>
    %76 = math.tanh %75 : vector<8x32xf32>
    %77 = arith.mulf %72, %76 : vector<8x32xf32>
    %78 = vector.extract_strided_slice %6 {offsets = [24, 0], sizes = [8, 128], strides = [1, 1]} : vector<64x128xf32> to vector<8x128xf32>
    %cst_21 = arith.constant dense<0.000000e+00> : vector<8x128xf32>
    %79 = tpu.matmul %77, %1, %cst_21 {dimension_numbers = #tpu.dot_dimension_numbers<[1], [0], [0], [1], [0, 0, 1, 1], [], []>} : vector<8x32xf32>, vector<32x128xf32>, vector<8x128xf32> -> vector<8x128xf32>
    %80 = arith.addf %78, %79 : vector<8x128xf32>
    %cst_22 = arith.constant 5.000000e-01 : f32
    %81 = vector.broadcast %cst_22 : f32 to vector<8x128xf32>
    %82 = arith.mulf %81, %80 : vector<8x128xf32>
    %83 = arith.select %12, %80, %82 : vector<8x128xi1>, vector<8x128xf32>
    %84 = math.tanh %83 : vector<8x128xf32>
    %cst_23 = arith.constant 5.000000e-01 : f32
    %85 = vector.broadcast %cst_23 : f32 to vector<8x128xf32>
    %86 = arith.mulf %85, %84 : vector<8x128xf32>
    %cst_24 = arith.constant 5.000000e-01 : f32
    %87 = vector.broadcast %cst_24 : f32 to vector<8x128xf32>
    %88 = arith.addf %87, %86 : vector<8x128xf32>
    %89 = arith.select %12, %84, %88 : vector<8x128xi1>, vector<8x128xf32>
    %90 = vector.extract_strided_slice %89 {offsets = [0, 0], sizes = [8, 32], strides = [1, 1]} : vector<8x128xf32> to vector<8x32xf32>
    %91 = vector.extract_strided_slice %89 {offsets = [0, 32], sizes = [8, 32], strides = [1, 1]} : vector<8x128xf32> to vector<8x32xf32>
    %92 = vector.extract_strided_slice %89 {offsets = [0, 64], sizes = [8, 32], strides = [1, 1]} : vector<8x128xf32> to vector<8x32xf32>
    %93 = vector.extract_strided_slice %89 {offsets = [0, 96], sizes = [8, 32], strides = [1, 1]} : vector<8x128xf32> to vector<8x32xf32>
    %94 = arith.mulf %91, %75 : vector<8x32xf32>
    %95 = arith.mulf %90, %92 : vector<8x32xf32>
    %96 = arith.addf %94, %95 : vector<8x32xf32>
    %97 = math.tanh %96 : vector<8x32xf32>
    %98 = arith.mulf %93, %97 : vector<8x32xf32>
    %99 = vector.extract_strided_slice %6 {offsets = [32, 0], sizes = [8, 128], strides = [1, 1]} : vector<64x128xf32> to vector<8x128xf32>
    %cst_25 = arith.constant dense<0.000000e+00> : vector<8x128xf32>
    %100 = tpu.matmul %98, %1, %cst_25 {dimension_numbers = #tpu.dot_dimension_numbers<[1], [0], [0], [1], [0, 0, 1, 1], [], []>} : vector<8x32xf32>, vector<32x128xf32>, vector<8x128xf32> -> vector<8x128xf32>
    %101 = arith.addf %99, %100 : vector<8x128xf32>
    %cst_26 = arith.constant 5.000000e-01 : f32
    %102 = vector.broadcast %cst_26 : f32 to vector<8x128xf32>
    %103 = arith.mulf %102, %101 : vector<8x128xf32>
    %104 = arith.select %12, %101, %103 : vector<8x128xi1>, vector<8x128xf32>
    %105 = math.tanh %104 : vector<8x128xf32>
    %cst_27 = arith.constant 5.000000e-01 : f32
    %106 = vector.broadcast %cst_27 : f32 to vector<8x128xf32>
    %107 = arith.mulf %106, %105 : vector<8x128xf32>
    %cst_28 = arith.constant 5.000000e-01 : f32
    %108 = vector.broadcast %cst_28 : f32 to vector<8x128xf32>
    %109 = arith.addf %108, %107 : vector<8x128xf32>
    %110 = arith.select %12, %105, %109 : vector<8x128xi1>, vector<8x128xf32>
    %111 = vector.extract_strided_slice %110 {offsets = [0, 0], sizes = [8, 32], strides = [1, 1]} : vector<8x128xf32> to vector<8x32xf32>
    %112 = vector.extract_strided_slice %110 {offsets = [0, 32], sizes = [8, 32], strides = [1, 1]} : vector<8x128xf32> to vector<8x32xf32>
    %113 = vector.extract_strided_slice %110 {offsets = [0, 64], sizes = [8, 32], strides = [1, 1]} : vector<8x128xf32> to vector<8x32xf32>
    %114 = vector.extract_strided_slice %110 {offsets = [0, 96], sizes = [8, 32], strides = [1, 1]} : vector<8x128xf32> to vector<8x32xf32>
    %115 = arith.mulf %112, %96 : vector<8x32xf32>
    %116 = arith.mulf %111, %113 : vector<8x32xf32>
    %117 = arith.addf %115, %116 : vector<8x32xf32>
    %118 = math.tanh %117 : vector<8x32xf32>
    %119 = arith.mulf %114, %118 : vector<8x32xf32>
    %120 = vector.extract_strided_slice %6 {offsets = [40, 0], sizes = [8, 128], strides = [1, 1]} : vector<64x128xf32> to vector<8x128xf32>
    %cst_29 = arith.constant dense<0.000000e+00> : vector<8x128xf32>
    %121 = tpu.matmul %119, %1, %cst_29 {dimension_numbers = #tpu.dot_dimension_numbers<[1], [0], [0], [1], [0, 0, 1, 1], [], []>} : vector<8x32xf32>, vector<32x128xf32>, vector<8x128xf32> -> vector<8x128xf32>
    %122 = arith.addf %120, %121 : vector<8x128xf32>
    %cst_30 = arith.constant 5.000000e-01 : f32
    %123 = vector.broadcast %cst_30 : f32 to vector<8x128xf32>
    %124 = arith.mulf %123, %122 : vector<8x128xf32>
    %125 = arith.select %12, %122, %124 : vector<8x128xi1>, vector<8x128xf32>
    %126 = math.tanh %125 : vector<8x128xf32>
    %cst_31 = arith.constant 5.000000e-01 : f32
    %127 = vector.broadcast %cst_31 : f32 to vector<8x128xf32>
    %128 = arith.mulf %127, %126 : vector<8x128xf32>
    %cst_32 = arith.constant 5.000000e-01 : f32
    %129 = vector.broadcast %cst_32 : f32 to vector<8x128xf32>
    %130 = arith.addf %129, %128 : vector<8x128xf32>
    %131 = arith.select %12, %126, %130 : vector<8x128xi1>, vector<8x128xf32>
    %132 = vector.extract_strided_slice %131 {offsets = [0, 0], sizes = [8, 32], strides = [1, 1]} : vector<8x128xf32> to vector<8x32xf32>
    %133 = vector.extract_strided_slice %131 {offsets = [0, 32], sizes = [8, 32], strides = [1, 1]} : vector<8x128xf32> to vector<8x32xf32>
    %134 = vector.extract_strided_slice %131 {offsets = [0, 64], sizes = [8, 32], strides = [1, 1]} : vector<8x128xf32> to vector<8x32xf32>
    %135 = vector.extract_strided_slice %131 {offsets = [0, 96], sizes = [8, 32], strides = [1, 1]} : vector<8x128xf32> to vector<8x32xf32>
    %136 = arith.mulf %133, %117 : vector<8x32xf32>
    %137 = arith.mulf %132, %134 : vector<8x32xf32>
    %138 = arith.addf %136, %137 : vector<8x32xf32>
    %139 = math.tanh %138 : vector<8x32xf32>
    %140 = arith.mulf %135, %139 : vector<8x32xf32>
    %141 = vector.extract_strided_slice %6 {offsets = [48, 0], sizes = [8, 128], strides = [1, 1]} : vector<64x128xf32> to vector<8x128xf32>
    %cst_33 = arith.constant dense<0.000000e+00> : vector<8x128xf32>
    %142 = tpu.matmul %140, %1, %cst_33 {dimension_numbers = #tpu.dot_dimension_numbers<[1], [0], [0], [1], [0, 0, 1, 1], [], []>} : vector<8x32xf32>, vector<32x128xf32>, vector<8x128xf32> -> vector<8x128xf32>
    %143 = arith.addf %141, %142 : vector<8x128xf32>
    %cst_34 = arith.constant 5.000000e-01 : f32
    %144 = vector.broadcast %cst_34 : f32 to vector<8x128xf32>
    %145 = arith.mulf %144, %143 : vector<8x128xf32>
    %146 = arith.select %12, %143, %145 : vector<8x128xi1>, vector<8x128xf32>
    %147 = math.tanh %146 : vector<8x128xf32>
    %cst_35 = arith.constant 5.000000e-01 : f32
    %148 = vector.broadcast %cst_35 : f32 to vector<8x128xf32>
    %149 = arith.mulf %148, %147 : vector<8x128xf32>
    %cst_36 = arith.constant 5.000000e-01 : f32
    %150 = vector.broadcast %cst_36 : f32 to vector<8x128xf32>
    %151 = arith.addf %150, %149 : vector<8x128xf32>
    %152 = arith.select %12, %147, %151 : vector<8x128xi1>, vector<8x128xf32>
    %153 = vector.extract_strided_slice %152 {offsets = [0, 0], sizes = [8, 32], strides = [1, 1]} : vector<8x128xf32> to vector<8x32xf32>
    %154 = vector.extract_strided_slice %152 {offsets = [0, 32], sizes = [8, 32], strides = [1, 1]} : vector<8x128xf32> to vector<8x32xf32>
    %155 = vector.extract_strided_slice %152 {offsets = [0, 64], sizes = [8, 32], strides = [1, 1]} : vector<8x128xf32> to vector<8x32xf32>
    %156 = vector.extract_strided_slice %152 {offsets = [0, 96], sizes = [8, 32], strides = [1, 1]} : vector<8x128xf32> to vector<8x32xf32>
    %157 = arith.mulf %154, %138 : vector<8x32xf32>
    %158 = arith.mulf %153, %155 : vector<8x32xf32>
    %159 = arith.addf %157, %158 : vector<8x32xf32>
    %160 = math.tanh %159 : vector<8x32xf32>
    %161 = arith.mulf %156, %160 : vector<8x32xf32>
    %162 = vector.extract_strided_slice %6 {offsets = [56, 0], sizes = [8, 128], strides = [1, 1]} : vector<64x128xf32> to vector<8x128xf32>
    %cst_37 = arith.constant dense<0.000000e+00> : vector<8x128xf32>
    %163 = tpu.matmul %161, %1, %cst_37 {dimension_numbers = #tpu.dot_dimension_numbers<[1], [0], [0], [1], [0, 0, 1, 1], [], []>} : vector<8x32xf32>, vector<32x128xf32>, vector<8x128xf32> -> vector<8x128xf32>
    %164 = arith.addf %162, %163 : vector<8x128xf32>
    %cst_38 = arith.constant 5.000000e-01 : f32
    %165 = vector.broadcast %cst_38 : f32 to vector<8x128xf32>
    %166 = arith.mulf %165, %164 : vector<8x128xf32>
    %167 = arith.select %12, %164, %166 : vector<8x128xi1>, vector<8x128xf32>
    %168 = math.tanh %167 : vector<8x128xf32>
    %cst_39 = arith.constant 5.000000e-01 : f32
    %169 = vector.broadcast %cst_39 : f32 to vector<8x128xf32>
    %170 = arith.mulf %169, %168 : vector<8x128xf32>
    %cst_40 = arith.constant 5.000000e-01 : f32
    %171 = vector.broadcast %cst_40 : f32 to vector<8x128xf32>
    %172 = arith.addf %171, %170 : vector<8x128xf32>
    %173 = arith.select %12, %168, %172 : vector<8x128xi1>, vector<8x128xf32>
    %174 = vector.extract_strided_slice %173 {offsets = [0, 0], sizes = [8, 32], strides = [1, 1]} : vector<8x128xf32> to vector<8x32xf32>
    %175 = vector.extract_strided_slice %173 {offsets = [0, 32], sizes = [8, 32], strides = [1, 1]} : vector<8x128xf32> to vector<8x32xf32>
    %176 = vector.extract_strided_slice %173 {offsets = [0, 64], sizes = [8, 32], strides = [1, 1]} : vector<8x128xf32> to vector<8x32xf32>
    %177 = vector.extract_strided_slice %173 {offsets = [0, 96], sizes = [8, 32], strides = [1, 1]} : vector<8x128xf32> to vector<8x32xf32>
    %178 = arith.mulf %175, %159 : vector<8x32xf32>
    %179 = arith.mulf %174, %176 : vector<8x32xf32>
    %180 = arith.addf %178, %179 : vector<8x32xf32>
    %181 = math.tanh %180 : vector<8x32xf32>
    %182 = arith.mulf %177, %181 : vector<8x32xf32>
    %183 = tpu.concatenate %35, %56, %77, %98, %119, %140, %161, %182 in 0 : vector<8x32xf32>, vector<8x32xf32>, vector<8x32xf32>, vector<8x32xf32>, vector<8x32xf32>, vector<8x32xf32>, vector<8x32xf32>, vector<8x32xf32> -> vector<64x32xf32>
    %c0_41 = arith.constant 0 : index
    %c0_42 = arith.constant 0 : index
    %184 = vector.load %arg5[%c0_41, %c0_42] : memref<32x128xf32, #tpu.memory_space<vmem>>, vector<32x128xf32>
    %cst_43 = arith.constant dense<0.000000e+00> : vector<64x128xf32>
    %185 = tpu.matmul %183, %184, %cst_43 {dimension_numbers = #tpu.dot_dimension_numbers<[1], [0], [0], [1], [0, 0, 1, 1], [], []>} : vector<64x32xf32>, vector<32x128xf32>, vector<64x128xf32> -> vector<64x128xf32>
    %c0_44 = arith.constant 0 : index
    %c0_45 = arith.constant 0 : index
    %186 = vector.load %arg6[%c0_44, %c0_45] : memref<1x128xf32, #tpu.memory_space<vmem>>, vector<1x128xf32>
    %187 = vector.broadcast %186 : vector<1x128xf32> to vector<64x128xf32>
    %188 = arith.addf %185, %187 : vector<64x128xf32>
    %c0_46 = arith.constant 0 : index
    %c0_47 = arith.constant 0 : index
    %189 = vector.load %arg7[%c0_46, %c0_47] : memref<64x128xf32, #tpu.memory_space<vmem>>, vector<64x128xf32>
    tpu.vector_store %arg7[%c0_46, %c0_47], %188 {strides = array<i32>} : memref<64x128xf32, #tpu.memory_space<vmem>>, vector<64x128xf32>,
    return
  }
  func.func @transform_0(%arg0: i32) -> (i32, i32) {
    %c0_i32 = arith.constant 0 : i32
    %c0_i32_0 = arith.constant 0 : i32
    %c0_i32_1 = arith.constant 0 : i32
    return %c0_i32, %c0_i32_0 : i32, i32
  }
  func.func @transform_1(%arg0: i32) -> (i32, i32) {
    %c0_i32 = arith.constant 0 : i32
    %c0_i32_0 = arith.constant 0 : i32
    %c0_i32_1 = arith.constant 0 : i32
    return %c0_i32, %c0_i32_0 : i32, i32
  }
  func.func @transform_2(%arg0: i32) -> (i32, i32) {
    %c0_i32 = arith.constant 0 : i32
    %c0_i32_0 = arith.constant 0 : i32
    %c0_i32_1 = arith.constant 0 : i32
    return %c0_i32, %c0_i32_0 : i32, i32
  }
  func.func @transform_3(%arg0: i32) -> (i32, i32) {
    %c0_i32 = arith.constant 0 : i32
    %c0_i32_0 = arith.constant 0 : i32
    %c0_i32_1 = arith.constant 0 : i32
    return %c0_i32, %c0_i32_0 : i32, i32
  }
  func.func @transform_4(%arg0: i32) -> (i32, i32) {
    %c0_i32 = arith.constant 0 : i32
    %c0_i32_0 = arith.constant 0 : i32
    %c0_i32_1 = arith.constant 0 : i32
    return %c0_i32, %c0_i32_0 : i32, i32
  }
  func.func @transform_5(%arg0: i32) -> (i32, i32) {
    %c0_i32 = arith.constant 0 : i32
    %c0_i32_0 = arith.constant 0 : i32
    %c0_i32_1 = arith.constant 0 : i32
    return %c0_i32, %c0_i32_0 : i32, i32
  }
  func.func @transform_6(%arg0: i32) -> (i32, i32) {
    %c0_i32 = arith.constant 0 : i32
    %c0_i32_0 = arith.constant 0 : i32
    %c0_i32_1 = arith.constant 0 : i32
    return %c0_i32, %c0_i32_0 : i32, i32
  }
}

</mosaic_0001>

<bundles_post_ra>
// kernel: tpu_custom_call.1
= control target key start
LH: loop header
LB: loop body
LE: loop exit
PB: predicated region body
PF: predicated region fallthrough
CT: control target
= control target key end

     0   :  { %vm45_vm0 = vcmask 130048   ;;  %s1725_s0 = inlined_call_operand.vmem [shape: f32[64,16], index: 0, kind: input, shape index: {}]   ;;  %s1726_s1 = inlined_call_operand.vmem [shape: f32[16,128], index: 1, kind: input, shape index: {}]   ;;  %s1727_s2 = inlined_call_operand.vmem [shape: f32[32,128], index: 2, kind: input, shape index: {}]   ;;  %s1728_s3 = inlined_call_operand.vmem [shape: f32[1,128], index: 3, kind: input, shape index: {}]   ;;  %s1729_s4 = inlined_call_operand.vmem [shape: f32[32,128], index: 4, kind: input, shape index: {}]   ;;  %s1730_s5 = inlined_call_operand.vmem [shape: f32[1,128], index: 5, kind: input, shape index: {}]   ;;  %s1731_s6 = inlined_call_operand.hbm [shape: f32[64,128], index: 6, kind: output, shape index: {}]  }
   0x1   :  { %v25_v0 = vld [vmem:[%s1726_s1 + $0x8] sm:$0xff]  ;;  %v24_v1 = vld [vmem:[%s1726_s1] sm:$0xff]  ;;  %v1450_v4 = vld [vmem:[%s1727_s2 + $0x18] sm:$0xff] }
   0x2   :  { %v34_v2 = vld [vmem:[%s1725_s0 + $0x20] sm:$0xff]  ;;  %1327 = vmatprep.subr.mxu1 %v25_v0  ;;  %1203 = vmatprep.subr.mxu0 %v25_v0  ;;  %v35_v3 = vld [vmem:[%s1725_s0 + $0x28] sm:$0xff] }
   0x3   :  { %1329 = vmatpush3.msra.mxu1 %v25_v0  ;;  %1213 = vmatprep.mubr.msk.f32.mxu1 %vm45_vm0, %v34_v2  ;;  %v30_v5 = vld [vmem:[%s1725_s0] sm:$0xff] }
   0x4   :  { %1328 = vmatprep.subr.mxu1 %v24_v1  ;;  %1204 = vmatpush3.msra.mxu0 %v25_v0 }
   0x5   :  { %1330 = vmatpush3.msra.mxu1 %v24_v1  ;;  %1205 = vmatprep.subr.mxu0 %v24_v1 }
   0x6   :  { %11 = vsyncpa [#allocation3], 0  ;;  %1214 = vmatmul.mubr.msk.f32.vlgmr.msra.gmra.mxu1 %vm45_vm0, %v35_v3  ;;  %v1392_v6 = vmov 0.0   ;;  %v31_v7 = vld [vmem:[%s1725_s0 + $0x8] sm:$0xff]  ;;  %v36_v8 = vld [vmem:[%s1725_s0 + $0x30] sm:$0xff]  ;;  %1206 = vmatpush3.msra.mxu0 %v24_v1  ;;  %vm1393_vm1 = vmmov 0   ;;  %v175_v14 = vlaneseq }
   0x7   :  { %1219 = vmatprep.subr.mxu1 %v1392_v6  ;;  %v1467_v9 = vld [vmem:[%s1727_s2 + $0x10] sm:$0xff]  ;;  %1207 = vmatprep.mubr.msk.f32.mxu0 %vm45_vm0, %v30_v5  ;;  %v37_v10 = vld [vmem:[%s1725_s0 + $0x38] sm:$0xff]  ;;  %v1479_v11 = vld [vmem:[%s1727_s2 + $0x8] sm:$0xff]  ;;  %s1395_s21 = smov 32   ;;  %vm180_vm5 = vcmask 261120  }
   0x8   :  { %1220 = vmatpush3.msra.mxu1 %v1450_v4  ;;  %1208 = vmatmul.mubr.msk.f32.vlgmr.msra.gmra.mxu0 %vm45_vm0, %v31_v7  ;;  %v1488_v12 = vld [vmem:[%s1727_s2] sm:$0xff]  ;;  %v176_v17 = vand.u32 127, %v175_v14  ;;  %v32_v57 = vld [vmem:[%s1725_s0 + $0x10] sm:$0xff]  ;;  %v33_v58 = vld [vmem:[%s1725_s0 + $0x18] sm:$0xff] }
   0x9   :  { %1221 = vmatprep.subr.mxu1 %v1392_v6  ;;  %1216 = vmatprep.mubr.msk.f32.mxu1 %vm45_vm0, %v36_v8  ;;  %v1524_v20 = vld [vmem:[%s1728_s3] ss:$0 sm:$0xff]  ;;  %s1394_s3 = smov 64  }
   0xa   :  { %1222 = vmatpush3.msra.mxu1 %v1467_v9  ;;  %1241 = vmatprep.subr.mxu0 %v1392_v6  ;;  %vm177_vm2 = vcmp.ge.s32.totalorder %v176_v17, 64  ;;  %vm178_vm3 = vcmp.lt.s32.totalorder %v176_v17, 96 }
   0xb   :  { %1217 = vmatmul.mubr.msk.f32.gmra.mxu1 %vm45_vm0, %v37_v10  ;;  %1223 = vmatprep.subr.mxu1 %v1392_v6  ;;  %vm1529_vm4 = vmand %vm177_vm2, %vm178_vm3 }
   0xc   :  { %1224 = vmatpush3.msra.mxu1 %v1479_v11  ;;  %1227 = vmatprep.mubr.msk.f32.mxu1 %vm1393_vm1, %v1392_v6 }
   0xd   :  { %1225 = vmatprep.subr.mxu1 %v1392_v6  ;;  %1242 = vmatpush3.msra.mxu0 %v1450_v4 }
   0xe   :  { %1226 = vmatpush3.msra.mxu1 %v1488_v12  ;;  %1243 = vmatprep.subr.mxu0 %v1392_v6 }
   0xf   :  { %1228 = vmatmul.mubr.f32.vlgmr.msra.gmra.mxu1 %v1392_v6  ;;  %1230 = vmatprep.subr.mxu1 %v1392_v6 }
  0x10   :  { %1231 = vmatpush3.msra.mxu1 %v1450_v4  ;;  %1238 = vmatprep.mubr.msk.f32.mxu1 %vm1393_vm1, %v1392_v6 }
  0x11   :  { %1232 = vmatprep.subr.mxu1 %v1392_v6  ;;  %1244 = vmatpush3.msra.mxu0 %v1467_v9 }
  0x12   :  { %1233 = vmatpush3.msra.mxu1 %v1467_v9  ;;  %1245 = vmatprep.subr.mxu0 %v1392_v6 }
  0x13   :  { %1234 = vmatprep.subr.mxu1 %v1392_v6  ;;  %1246 = vmatpush3.msra.mxu0 %v1479_v11 }
  0x14   :  { %1235 = vmatpush3.msra.mxu1 %v1479_v11  ;;  %1247 = vmatprep.subr.mxu0 %v1392_v6 }
  0x15   :  { %1236 = vmatprep.subr.mxu1 %v1392_v6  ;;  %1248 = vmatpush3.msra.mxu0 %v1488_v12 }
  0x16   :  { %1237 = vmatpush3.msra.mxu1 %v1488_v12  ;;  %1263 = vmatprep.subr.mxu0 %v1392_v6 }
  0x17   :  { %1252 = vmatprep.subr.mxu1 %v1392_v6  ;;  %1210 = vmatprep.mubr.msk.f32.mxu0 %vm45_vm0, %v32_v57 }
  0x18   :  { %1211 = vmatmul.mubr.msk.f32.gmra.mxu0 %vm45_vm0, %v33_v58 }
  0x19   :  { %1249 = vmatprep.mubr.msk.f32.mxu0 %vm1393_vm1, %v1392_v6 }
  0xc6   :  { %v1515_v13 = vpop.f32.mrf.mxu1 }
  0xc8   :  { %v1517_v15 = vpop.f32.mrf.mxu1  ;;  %v1209_v16 = vpop.f32.mrf.mxu0 }
  0xc9   :  { %v142_v42 = vadd.f32 %v1209_v16, %v1524_v20 }
  0xca   :  { %v136_v19 = vpop.f32.mrf.mxu0 }
  0xcb   :  { %v1519_v18 = vpop.f32.mrf.mxu1  ;;  %v137_v22 = vadd.f32 %v1524_v20, %v136_v19 }
  0xcd   :  { %v1526_v21 = vpop.f32.mrf.mxu1 }
  0xcf   :  { %v250_v23 = vpop.f32.mrf.mxu1 }
  0xd0   :  { %v254_v24 = vadd.f32 %v250_v23, %v137_v22 }
  0xd1   :  { %v1229_v26 = vpop.f32.mrf.mxu1 }
  0xd2   :  { %v255_v27 = vmul.f32 0.5, %v254_v24 }
  0xd4   :  { %v256_v28 = vsel %vm1529_vm4, %v254_v24, %v255_v27 }
  0xd5   :  { %1338 = vtanh.f32 %v256_v28 }
  0xd8   :  { %v1212_v63 = vpop.f32.mrf.mxu0 }
  0xda   :  { %v146_v0 = vpop.f32.mrf.mxu0 }
  0xdb   :  { %v147_v1 = vadd.f32 %v1524_v20, %v146_v0 }
  0xe2   :  { %v1339_v29 = vpop.eup %1338 }
  0xe3   :  { %v258_v30 = vmul.f32 0.5, %v1339_v29 }
  0xe5   :  { %v259_v31 = vadd.f32 0.5, %v258_v30 }
  0xe7   :  { %v260_v32 = vsel %vm1529_vm4, %v1339_v29, %v259_v31  ;;  %v152_v31 = vadd.f32 %v1212_v63, %v1524_v20 }
  0xe8   :  { %263 = vrot.lane.b32.xlu0 %v260_v32, %s1394_s3  ;;  %v261_v35 = vmul.f32 0.0, %v260_v32 }
 0x15a   :  { %v264_v33 = vpop.permute.xlu0 %263 }
 0x15b   :  { %v266_v34 = vmul.f32 %v264_v33, %v260_v32 }
 0x15d   :  { %268 = vrot.lane.b32.xlu0 %v266_v34, %s1395_s21 }
 0x1cf   :  { %v269_v36 = vpop.permute.xlu0 %268 }
 0x1d0   :  { %v271_v37 = vadd.f32 %v269_v36, %v261_v35 }
 0x1d2   :  { %1340 = vtanh.f32 %v271_v37 }
 0x1df   :  { %v1341_v38 = vpop.eup %1340 }
 0x1e0   :  { %274 = vrot.lane.b32.xlu1 %v1341_v38, %s1394_s3 }
 0x252   :  { %v275_v39 = vpop.permute.xlu1 %274 }
 0x253   :  { %v277_v40 = vmul.f32 %v275_v39, %v260_v32 }
 0x255   :  { %279 = vrot.lane.b32.xlu1 %v277_v40, %s1395_s21 }
 0x2c7   :  { %v1541_v41 = vpop.permute.xlu1 %279 }
 0x2c8   :  { %1239 = vmatmul.mubr.msk.f32.vlgmr.msra.gmra.mxu1 %vm180_vm5, %v1541_v41 }
 0x2c9   :  { %1253 = vmatpush3.msra.mxu1 %v1450_v4  ;;  %1260 = vmatprep.mubr.msk.f32.mxu1 %vm1393_vm1, %v1392_v6 }
 0x2ca   :  { %1254 = vmatprep.subr.mxu1 %v1392_v6 }
 0x2cb   :  { %1255 = vmatpush3.msra.mxu1 %v1467_v9 }
 0x2cc   :  { %1256 = vmatprep.subr.mxu1 %v1392_v6 }
 0x2cd   :  { %1257 = vmatpush3.msra.mxu1 %v1479_v11 }
 0x2ce   :  { %1258 = vmatprep.subr.mxu1 %v1392_v6 }
 0x2cf   :  { %1259 = vmatpush3.msra.mxu1 %v1488_v12 }
 0x2d0   :  { %1274 = vmatprep.subr.mxu1 %v1392_v6 }
 0x388   :  { %v349_v43 = vpop.f32.mrf.mxu1 }
 0x389   :  { %v353_v44 = vadd.f32 %v349_v43, %v142_v42 }
 0x38a   :  { %v1240_v45 = vpop.f32.mrf.mxu1 }
 0x38b   :  { %v354_v46 = vmul.f32 0.5, %v353_v44 }
 0x38d   :  { %v355_v47 = vsel %vm1529_vm4, %v353_v44, %v354_v46 }
 0x38e   :  { %1342 = vtanh.f32 %v355_v47 }
 0x39b   :  { %v1343_v48 = vpop.eup %1342 }
 0x39c   :  { %v357_v49 = vmul.f32 0.5, %v1343_v48 }
 0x39e   :  { %v358_v50 = vadd.f32 0.5, %v357_v49 }
 0x3a0   :  { %v359_v51 = vsel %vm1529_vm4, %v1343_v48, %v358_v50 }
 0x3a1   :  { %362 = vrot.lane.b32.xlu0 %v359_v51, %s1394_s3  ;;  %v360_v54 = vmul.f32 %v359_v51, %v271_v37 }
 0x413   :  { %v363_v52 = vpop.permute.xlu0 %362 }
 0x414   :  { %v365_v53 = vmul.f32 %v363_v52, %v359_v51 }
 0x416   :  { %367 = vrot.lane.b32.xlu1 %v365_v53, %s1395_s21 }
 0x488   :  { %v368_v55 = vpop.permute.xlu1 %367 }
 0x489   :  { %v370_v56 = vadd.f32 %v368_v55, %v360_v54 }
 0x48b   :  { %1344 = vtanh.f32 %v370_v56 }
 0x498   :  { %v1345_v59 = vpop.eup %1344 }
 0x499   :  { %373 = vrot.lane.b32.xlu0 %v1345_v59, %s1394_s3 }
 0x50b   :  { %v374_v60 = vpop.permute.xlu0 %373 }
 0x50c   :  { %v376_v61 = vmul.f32 %v374_v60, %v359_v51  ;;  %v157_v51 = vadd.f32 %v1524_v20, %v1517_v15 }
 0x50e   :  { %378 = vrot.lane.b32.xlu1 %v376_v61, %s1395_s21 }
 0x580   :  { %v1574_v62 = vpop.permute.xlu1 %378 }
 0x581   :  { %1250 = vmatmul.mubr.msk.f32.vlgmr.msra.gmra.mxu0 %vm180_vm5, %v1574_v62 }
 0x582   :  { %1264 = vmatpush3.msra.mxu0 %v1450_v4  ;;  %1271 = vmatprep.mubr.msk.f32.mxu0 %vm1393_vm1, %v1392_v6 }
 0x583   :  { %1265 = vmatprep.subr.mxu0 %v1392_v6 }
 0x584   :  { %1266 = vmatpush3.msra.mxu0 %v1467_v9 }
 0x585   :  { %1267 = vmatprep.subr.mxu0 %v1392_v6 }
 0x586   :  { %1268 = vmatpush3.msra.mxu0 %v1479_v11 }
 0x587   :  { %1269 = vmatprep.subr.mxu0 %v1392_v6 }
 0x588   :  { %1270 = vmatpush3.msra.mxu0 %v1488_v12 }
 0x589   :  { %1285 = vmatprep.subr.mxu0 %v1392_v6 }
 0x641   :  { %v448_v2 = vpop.f32.mrf.mxu0 }
 0x642   :  { %v452_v3 = vadd.f32 %v448_v2, %v147_v1 }
 0x643   :  { %v1251_v5 = vpop.f32.mrf.mxu0 }
 0x644   :  { %v453_v7 = vmul.f32 0.5, %v452_v3 }
 0x646   :  { %v454_v8 = vsel %vm1529_vm4, %v452_v3, %v453_v7 }
 0x647   :  { %1346 = vtanh.f32 %v454_v8  ;;  %v162_v8 = vadd.f32 %v1515_v13, %v1524_v20 }
 0x654   :  { %v1347_v10 = vpop.eup %1346 }
 0x655   :  { %v456_v14 = vmul.f32 0.5, %v1347_v10 }
 0x657   :  { %v457_v16 = vadd.f32 0.5, %v456_v14 }
 0x659   :  { %v458_v17 = vsel %vm1529_vm4, %v1347_v10, %v457_v16 }
 0x65a   :  { %461 = vrot.lane.b32.xlu0 %v458_v17, %s1394_s3  ;;  %v459_v23 = vmul.f32 %v458_v17, %v370_v56 }
 0x6cc   :  { %v462_v19 = vpop.permute.xlu0 %461 }
 0x6cd   :  { %v464_v22 = vmul.f32 %v462_v19, %v458_v17 }
 0x6cf   :  { %466 = vrot.lane.b32.xlu1 %v464_v22, %s1395_s21 }
 0x741   :  { %v467_v24 = vpop.permute.xlu1 %466 }
 0x742   :  { %v469_v26 = vadd.f32 %v467_v24, %v459_v23 }
 0x744   :  { %1348 = vtanh.f32 %v469_v26 }
 0x751   :  { %v1349_v27 = vpop.eup %1348 }
 0x752   :  { %472 = vrot.lane.b32.xlu0 %v1349_v27, %s1394_s3 }
 0x7c4   :  { %v473_v28 = vpop.permute.xlu0 %472 }
 0x7c5   :  { %v475_v29 = vmul.f32 %v473_v28, %v458_v17 }
 0x7c7   :  { %477 = vrot.lane.b32.xlu1 %v475_v29, %s1395_s21 }
 0x839   :  { %v1597_v30 = vpop.permute.xlu1 %477 }
 0x83a   :  { %1261 = vmatmul.mubr.msk.f32.vlgmr.msra.gmra.mxu1 %vm180_vm5, %v1597_v30 }
 0x83b   :  { %1275 = vmatpush3.msra.mxu1 %v1450_v4  ;;  %1282 = vmatprep.mubr.msk.f32.mxu1 %vm1393_vm1, %v1392_v6 }
 0x83c   :  { %1276 = vmatprep.subr.mxu1 %v1392_v6 }
 0x83d   :  { %1277 = vmatpush3.msra.mxu1 %v1467_v9 }
 0x83e   :  { %1278 = vmatprep.subr.mxu1 %v1392_v6 }
 0x83f   :  { %1279 = vmatpush3.msra.mxu1 %v1479_v11 }
 0x840   :  { %1280 = vmatprep.subr.mxu1 %v1392_v6 }
 0x841   :  { %1281 = vmatpush3.msra.mxu1 %v1488_v12 }
 0x842   :  { %1296 = vmatprep.subr.mxu1 %v1392_v6 }
 0x8fa   :  { %v547_v32 = vpop.f32.mrf.mxu1 }
 0x8fb   :  { %v551_v33 = vadd.f32 %v547_v32, %v152_v31  ;;  %v973_v32 = vld [vmem:[%s1729_s4 + $0x10] sm:$0xff] }
 0x8fc   :  { %v1262_v34 = vpop.f32.mrf.mxu1 }
 0x8fd   :  { %v552_v35 = vmul.f32 0.5, %v551_v33  ;;  %v971_v34 = vld [vmem:[%s1729_s4] sm:$0xff] }
 0x8ff   :  { %v553_v36 = vsel %vm1529_vm4, %v551_v33, %v552_v35  ;;  %v972_v33 = vld [vmem:[%s1729_s4 + $0x8] sm:$0xff] }
 0x900   :  { %1350 = vtanh.f32 %v553_v36 }
 0x90d   :  { %v1351_v37 = vpop.eup %1350 }
 0x90e   :  { %v555_v38 = vmul.f32 0.5, %v1351_v37 }
 0x910   :  { %v556_v39 = vadd.f32 0.5, %v555_v38 }
 0x912   :  { %v557_v40 = vsel %vm1529_vm4, %v1351_v37, %v556_v39 }
 0x913   :  { %560 = vrot.lane.b32.xlu0 %v557_v40, %s1394_s3  ;;  %v558_v44 = vmul.f32 %v557_v40, %v469_v26  ;;  %v974_v26 = vld [vmem:[%s1729_s4 + $0x18] sm:$0xff] }
 0x985   :  { %v561_v42 = vpop.permute.xlu0 %560 }
 0x986   :  { %v563_v43 = vmul.f32 %v561_v42, %v557_v40 }
 0x988   :  { %565 = vrot.lane.b32.xlu1 %v563_v43, %s1395_s21 }
 0x9fa   :  { %v566_v45 = vpop.permute.xlu1 %565 }
 0x9fb   :  { %v568_v46 = vadd.f32 %v566_v45, %v558_v44 }
 0x9fd   :  { %1352 = vtanh.f32 %v568_v46 }
 0xa0a   :  { %v1353_v47 = vpop.eup %1352 }
 0xa0b   :  { %571 = vrot.lane.b32.xlu0 %v1353_v47, %s1394_s3 }
 0xa7d   :  { %v572_v48 = vpop.permute.xlu0 %571 }
 0xa7e   :  { %v574_v49 = vmul.f32 %v572_v48, %v557_v40 }
 0xa80   :  { %576 = vrot.lane.b32.xlu1 %v574_v49, %s1395_s21 }
 0xaf2   :  { %v1620_v50 = vpop.permute.xlu1 %576 }
 0xaf3   :  { %1272 = vmatmul.mubr.msk.f32.vlgmr.msra.gmra.mxu0 %vm180_vm5, %v1620_v50 }
 0xaf4   :  { %1286 = vmatpush3.msra.mxu0 %v1450_v4  ;;  %1293 = vmatprep.mubr.msk.f32.mxu0 %vm1393_vm1, %v1392_v6 }
 0xaf5   :  { %1287 = vmatprep.subr.mxu0 %v1392_v6 }
 0xaf6   :  { %1288 = vmatpush3.msra.mxu0 %v1467_v9 }
 0xaf7   :  { %1289 = vmatprep.subr.mxu0 %v1392_v6 }
 0xaf8   :  { %1290 = vmatpush3.msra.mxu0 %v1479_v11 }
 0xaf9   :  { %1291 = vmatprep.subr.mxu0 %v1392_v6 }
 0xafa   :  { %1292 = vmatpush3.msra.mxu0 %v1488_v12 }
 0xafb   :  { %1307 = vmatprep.subr.mxu0 %v974_v26 }
 0xbb3   :  { %v646_v52 = vpop.f32.mrf.mxu0 }
 0xbb4   :  { %v650_v53 = vadd.f32 %v646_v52, %v157_v51 }
 0xbb5   :  { %v1273_v54 = vpop.f32.mrf.mxu0 }
 0xbb6   :  { %v651_v55 = vmul.f32 0.5, %v650_v53 }
 0xbb8   :  { %v652_v56 = vsel %vm1529_vm4, %v650_v53, %v651_v55 }
 0xbb9   :  { %1354 = vtanh.f32 %v652_v56 }
 0xbc6   :  { %v1355_v57 = vpop.eup %1354 }
 0xbc7   :  { %v654_v58 = vmul.f32 0.5, %v1355_v57 }
 0xbc9   :  { %v655_v59 = vadd.f32 0.5, %v654_v58 }
 0xbcb   :  { %v656_v60 = vsel %vm1529_vm4, %v1355_v57, %v655_v59 }
 0xbcc   :  { %659 = vrot.lane.b32.xlu0 %v656_v60, %s1394_s3  ;;  %v657_v15 = vmul.f32 %v656_v60, %v568_v46 }
 0xc3e   :  { %v660_v61 = vpop.permute.xlu0 %659 }
 0xc3f   :  { %v662_v63 = vmul.f32 %v660_v61, %v656_v60 }
 0xc41   :  { %664 = vrot.lane.b32.xlu1 %v662_v63, %s1395_s21 }
 0xcb3   :  { %v665_v0 = vpop.permute.xlu1 %664 }
 0xcb4   :  { %v667_v1 = vadd.f32 %v665_v0, %v657_v15  ;;  %v172_v0 = vadd.f32 %v1519_v18, %v1524_v20 }
 0xcb6   :  { %1356 = vtanh.f32 %v667_v1 }
 0xcc3   :  { %v1357_v2 = vpop.eup %1356 }
 0xcc4   :  { %670 = vrot.lane.b32.xlu0 %v1357_v2, %s1394_s3 }
 0xd36   :  { %v671_v3 = vpop.permute.xlu0 %670 }
 0xd37   :  { %v673_v5 = vmul.f32 %v671_v3, %v656_v60 }
 0xd39   :  { %675 = vrot.lane.b32.xlu1 %v673_v5, %s1395_s21 }
 0xdab   :  { %v676_v7 = vpop.permute.xlu1 %675 }
 0xdac   :  { %1283 = vmatmul.mubr.msk.f32.vlgmr.msra.gmra.mxu1 %vm180_vm5, %v676_v7 }
 0xdad   :  { %1297 = vmatpush3.msra.mxu1 %v1450_v4  ;;  %1304 = vmatprep.mubr.msk.f32.mxu1 %vm1393_vm1, %v1392_v6 }
 0xdae   :  { %1298 = vmatprep.subr.mxu1 %v1392_v6 }
 0xdaf   :  { %1299 = vmatpush3.msra.mxu1 %v1467_v9 }
 0xdb0   :  { %1300 = vmatprep.subr.mxu1 %v1392_v6 }
 0xdb1   :  { %1301 = vmatpush3.msra.mxu1 %v1479_v11 }
 0xdb2   :  { %1302 = vmatprep.subr.mxu1 %v1392_v6 }
 0xdb3   :  { %1303 = vmatpush3.msra.mxu1 %v1488_v12 }
 0xe6c   :  { %v745_v10 = vpop.f32.mrf.mxu1 }
 0xe6d   :  { %v749_v4 = vadd.f32 %v745_v10, %v162_v8 }
 0xe6e   :  { %v1284_v14 = vpop.f32.mrf.mxu1 }
 0xe6f   :  { %v750_v16 = vmul.f32 0.5, %v749_v4 }
 0xe71   :  { %v751_v17 = vsel %vm1529_vm4, %v749_v4, %v750_v16 }
 0xe72   :  { %1358 = vtanh.f32 %v751_v17 }
 0xe7f   :  { %v1359_v9 = vpop.eup %1358 }
 0xe80   :  { %v753_v19 = vmul.f32 0.5, %v1359_v9 }
 0xe82   :  { %v754_v22 = vadd.f32 0.5, %v753_v19 }
 0xe84   :  { %v755_v11 = vsel %vm1529_vm4, %v1359_v9, %v754_v22 }
 0xe85   :  { %758 = vrot.lane.b32.xlu0 %v755_v11, %s1394_s3  ;;  %v756_v13 = vmul.f32 %v755_v11, %v667_v1 }
 0xef7   :  { %v759_v6 = vpop.permute.xlu0 %758 }
 0xef8   :  { %v761_v12 = vmul.f32 %v759_v6, %v755_v11 }
 0xefa   :  { %763 = vrot.lane.b32.xlu1 %v761_v12, %s1395_s21 }
 0xf6c   :  { %v764_v23 = vpop.permute.xlu1 %763 }
 0xf6d   :  { %v766_v24 = vadd.f32 %v764_v23, %v756_v13 }
 0xf6f   :  { %1360 = vtanh.f32 %v766_v24 }
 0xf7c   :  { %v1361_v27 = vpop.eup %1360 }
 0xf7d   :  { %769 = vrot.lane.b32.xlu0 %v1361_v27, %s1394_s3 }
 0xfef   :  { %v770_v28 = vpop.permute.xlu0 %769 }
 0xff0   :  { %v772_v29 = vmul.f32 %v770_v28, %v755_v11 }
 0xff2   :  { %774 = vrot.lane.b32.xlu1 %v772_v29, %s1395_s21 }
0x1064   :  { %v775_v31 = vpop.permute.xlu1 %774 }
0x1065   :  { %1294 = vmatmul.mubr.msk.f32.vlgmr.msra.gmra.mxu0 %vm180_vm5, %v775_v31 }
0x1066   :  { %1308 = vmatpush3.msra.mxu0 %v974_v26  ;;  %1315 = vmatprep.mubr.msk.f32.mxu0 %vm180_vm5, %v1541_v41  ;;  %v167_v41 = vadd.f32 %v1524_v20, %v1526_v21 }
0x1067   :  { %1309 = vmatprep.subr.mxu0 %v973_v32 }
0x1068   :  { %1310 = vmatpush3.msra.mxu0 %v973_v32 }
0x1069   :  { %1311 = vmatprep.subr.mxu0 %v972_v33 }
0x106a   :  { %1312 = vmatpush3.msra.mxu0 %v972_v33 }
0x106b   :  { %1313 = vmatprep.subr.mxu0 %v971_v34 }
0x106c   :  { %1314 = vmatpush3.msra.mxu0 %v971_v34 }
0x106d   :  { %1316 = vmatmul.mubr.msk.f32.vlgmr.msra.gmra.mxu0 %vm180_vm5, %v1574_v62 }
0x106e   :  { %1318 = vmatprep.mubr.msk.f32.mxu0 %vm180_vm5, %v1597_v30  ;;  %v1693_v30 = vld [vmem:[%s1730_s5] ss:$0 sm:$0xff]  ;;  %s1396_s5 = smov [#allocation2]  }
0x106f   :  { %s1105_s9 = sshll.u32 %s1396_s5, 4  ;;  %s1106_s9 = int_to_ptr.vmem [resolvable:$true] %s1105_s9 }
0x1070   :  { %s1370_s10 = scalar_lea.vmem %s1106_s9, 1024  ;;  %p1375_p1 = scmp.lt.s32.totalorder %s1106_s9, %s1106_s9 }
0x1071   :  { %1319 = vmatmul.mubr.msk.f32.gmra.mxu0 %vm180_vm5, %v1620_v50  ;;  %p1371_p0 = scmp.ne.s32.totalorder %s1106_s9, %s1370_s10  ;;  %p1376_p2 = scmp.lt.s32.totalorder %s1370_s10, %s1370_s10 }
0x1072   :  { %1321 = vmatprep.mubr.msk.f32.mxu0 %vm180_vm5, %v676_v7 }
0x1073   :  { %p1377_p3 = por %p1376_p2, %p1375_p1 }
0x1075   :  { %1322 = vmatmul.mubr.msk.f32.gmra.mxu0 %vm180_vm5, %v775_v31  ;;  %p1378_p4 = pnand %p1377_p3, %p1371_p0 }
0x1125   :  { %v844_v35 = vpop.f32.mrf.mxu0 }
0x1126   :  { %v848_v36 = vadd.f32 %v844_v35, %v167_v41 }
0x1127   :  { %v1295_v37 = vpop.f32.mrf.mxu0 }
0x1128   :  { %v849_v38 = vmul.f32 0.5, %v848_v36 }
0x112a   :  { %v850_v62 = vsel %vm1529_vm4, %v848_v36, %v849_v38 }
0x112b   :  { %1362 = vtanh.f32 %v850_v62 }
0x112d   :  { %v1317_v39 = vpop.f32.mrf.mxu0 }
0x112e   :  { %v1059_v40 = vadd.f32 %v1317_v39, %v1693_v30 }
0x112f   :  { %v1053_v42 = vpop.f32.mrf.mxu0 }
0x1130   :  { %1093 = vst [vmem:[#allocation2 + $0x8] sm:$0xff] %v1059_v40  ;;  %v1054_v21 = vadd.f32 %v1693_v30, %v1053_v42 }
0x1131   :  { %v1320_v43 = vpop.f32.mrf.mxu0 }
0x1132   :  { %1092 = vst [vmem:[#allocation2] sm:$0xff] %v1054_v21  ;;  %v1069_v44 = vadd.f32 %v1320_v43, %v1693_v30 }
0x1133   :  { %v1063_v45 = vpop.f32.mrf.mxu0 }
0x1134   :  { %1095 = vst [vmem:[#allocation2 + $0x18] sm:$0xff] %v1069_v44  ;;  %v1064_v46 = vadd.f32 %v1693_v30, %v1063_v45 }
0x1135   :  { %v1323_v47 = vpop.f32.mrf.mxu0 }
0x1136   :  { %1094 = vst [vmem:[#allocation2 + $0x10] sm:$0xff] %v1064_v46  ;;  %v1079_v48 = vadd.f32 %v1323_v47, %v1693_v30 }
0x1137   :  { %v1073_v49 = vpop.f32.mrf.mxu0 }
0x1138   :  { %v1363_v50 = vpop.eup %1362  ;;  %1097 = vst [vmem:[#allocation2 + $0x28] sm:$0xff] %v1079_v48  ;;  %v1074_v51 = vadd.f32 %v1693_v30, %v1073_v49 }
0x1139   :  { %v852_v52 = vmul.f32 0.5, %v1363_v50 }
0x113a   :  { %1096 = vst [vmem:[#allocation2 + $0x20] sm:$0xff] %v1074_v51 }
0x113b   :  { %v853_v53 = vadd.f32 0.5, %v852_v52 }
0x113d   :  { %v854_v54 = vsel %vm1529_vm4, %v1363_v50, %v853_v53 }
0x113e   :  { %857 = vrot.lane.b32.xlu0 %v854_v54, %s1394_s3  ;;  %v855_v57 = vmul.f32 %v854_v54, %v766_v24 }
0x11b0   :  { %v858_v55 = vpop.permute.xlu0 %857 }
0x11b1   :  { %v860_v56 = vmul.f32 %v858_v55, %v854_v54 }
0x11b3   :  { %862 = vrot.lane.b32.xlu1 %v860_v56, %s1395_s21 }
0x1225   :  { %v863_v58 = vpop.permute.xlu1 %862 }
0x1226   :  { %v865_v59 = vadd.f32 %v863_v58, %v855_v57 }
0x1228   :  { %1364 = vtanh.f32 %v865_v59 }
0x1235   :  { %v1365_v60 = vpop.eup %1364 }
0x1236   :  { %868 = vrot.lane.b32.xlu0 %v1365_v60, %s1394_s3 }
0x12a8   :  { %v869_v61 = vpop.permute.xlu0 %868 }
0x12a9   :  { %v871_v63 = vmul.f32 %v869_v61, %v854_v54 }
0x12ab   :  { %873 = vrot.lane.b32.xlu1 %v871_v63, %s1395_s21 }
0x131d   :  { %v874_v15 = vpop.permute.xlu1 %873 }
0x131e   :  { %1305 = vmatmul.mubr.msk.f32.vlgmr.msra.gmra.mxu1 %vm180_vm5, %v874_v15  ;;  %1324 = vmatprep.mubr.msk.f32.mxu0 %vm180_vm5, %v874_v15 }
0x13de   :  { %v943_v1 = vpop.f32.mrf.mxu1 }
0x13df   :  { %v947_v2 = vadd.f32 %v943_v1, %v172_v0 }
0x13e0   :  { %v1306_v3 = vpop.f32.mrf.mxu1 }
0x13e1   :  { %v948_v5 = vmul.f32 0.5, %v947_v2 }
0x13e3   :  { %v949_v7 = vsel %vm1529_vm4, %v947_v2, %v948_v5 }
0x13e4   :  { %1366 = vtanh.f32 %v949_v7 }
0x13f1   :  { %v1367_v8 = vpop.eup %1366 }
0x13f2   :  { %v951_v10 = vmul.f32 0.5, %v1367_v8 }
0x13f4   :  { %v952_v4 = vadd.f32 0.5, %v951_v10 }
0x13f6   :  { %v953_v14 = vsel %vm1529_vm4, %v1367_v8, %v952_v4 }
0x13f7   :  { %956 = vrot.lane.b32.xlu0 %v953_v14, %s1394_s3  ;;  %v954_v18 = vmul.f32 %v953_v14, %v865_v59 }
0x1469   :  { %v957_v16 = vpop.permute.xlu0 %956 }
0x146a   :  { %v959_v17 = vmul.f32 %v957_v16, %v953_v14 }
0x146c   :  { %961 = vrot.lane.b32.xlu1 %v959_v17, %s1395_s21 }
0x14de   :  { %v962_v20 = vpop.permute.xlu1 %961 }
0x14df   :  { %v964_v9 = vadd.f32 %v962_v20, %v954_v18 }
0x14e1   :  { %1368 = vtanh.f32 %v964_v9 }
0x14ee   :  { %v1369_v19 = vpop.eup %1368 }
0x14ef   :  { %967 = vrot.lane.b32.xlu0 %v1369_v19, %s1394_s3 }
0x1561   :  { %v968_v22 = vpop.permute.xlu0 %967 }
0x1562   :  { %v970_v11 = vmul.f32 %v968_v22, %v953_v14 }
0x1564   :  { %983 = vrot.lane.b32.xlu1 %v970_v11, %s1395_s21 }
0x15d6   :  { %v984_v6 = vpop.permute.xlu1 %983 }
0x15d7   :  { %1325 = vmatmul.mubr.msk.f32.gmra.mxu0 %vm180_vm5, %v984_v6 }
0x1697   :  { %v1326_v25 = vpop.f32.mrf.mxu0 }
0x1698   :  { %v1089_v12 = vadd.f32 %v1326_v25, %v1693_v30 }
0x1699   :  { %v1083_v13 = vpop.f32.mrf.mxu0 }
0x169a   :  { %1099 = vst [vmem:[#allocation2 + $0x38] sm:$0xff] %v1089_v12  ;;  %v1084_v23 = vadd.f32 %v1693_v30, %v1083_v13 }
0x169c   :  { %1098 = vst [vmem:[#allocation2 + $0x30] sm:$0xff] %v1084_v23 }
0x169d   :  { %1381 = shalt.err (!%p1378_p4)
}
0x169e   :  { %s1397_s11 = smov 128   ;;  %s1398_s12 = smov 8  }
0x169f   :  { %1111 = dma.vmem_to_hbm [thread:$0]  %s1106_s9, 1024, %s1731_s6, [#allocation3], %s1397_s11, %s1397_s11, %s1398_s12  }
0x16a0   :  { %1390 = dma.done.wait [#allocation3], 1024  }
0x16a1   :  { %1391 = vsyncadd [#allocation3], 4294966272 }
0x16a2   :  { %1115 = vsyncpa [#allocation3], 1 }

</bundles_post_ra>
